<compile_context>
chip_gen: v6e
topology: v6e:2x2x1
jax: 0.10.0
libtpu: 0.0.40
codegen_flags: <defaults>
</compile_context>

<pallas_src>
import functools

import jax
import jax.numpy as jnp
from jax.experimental import pallas as pl
from jax.experimental.pallas import tpu as pltpu


# ----------------------------- Pallas kernels -------------------------------

def _mm_bias_act_kernel(a_ref, w_ref, b_ref, o_ref, *, relu):
    # conv-as-matmul with folded-BN bias (+ optional ReLU) fused in the epilogue
    acc = jnp.dot(a_ref[...], w_ref[...], preferred_element_type=jnp.float32)
    acc = acc + b_ref[...]
    if relu:
        acc = jnp.maximum(acc, 0.0)
    o_ref[...] = acc.astype(o_ref.dtype)


def _mm_bias_res_relu_kernel(a_ref, w_ref, b_ref, r_ref, o_ref):
    # last 1x1 conv of a bottleneck: conv + bias + residual add + ReLU fused
    acc = jnp.dot(a_ref[...], w_ref[...], preferred_element_type=jnp.float32)
    acc = acc + b_ref[...] + r_ref[...].astype(jnp.float32)
    o_ref[...] = jnp.maximum(acc, 0.0).astype(o_ref.dtype)


def _max9_kernel(x_ref, o_ref):
    # max over the 9 taps of the 3x3/2 maxpool (lane-dense layout)
    m = x_ref[0]
    for i in range(1, x_ref.shape[0]):
        m = jnp.maximum(m, x_ref[i])
    o_ref[...] = m


def _head_kernel(x_ref, w1_ref, b1_ref, w2_ref, b2_ref, o_ref):
    x = x_ref[...].astype(jnp.float32)               # (B, HW, C)
    hw = x.shape[1]
    pooled = jnp.sum(x, axis=1) * (1.0 / hw)         # adaptive avg pool -> (B, C)
    h = jnp.dot(pooled, w1_ref[...], preferred_element_type=jnp.float32)
    h = jnp.maximum(h + b1_ref[...], 0.0)            # Linear(2048,256) + ReLU
    # TODO(synk): nn.Dropout(0.4) is the identity here (inference semantics).
    logits = jnp.dot(h, w2_ref[...], preferred_element_type=jnp.float32) + b2_ref[...]
    m = jnp.max(logits, axis=1, keepdims=True)
    z = logits - m
    lse = jnp.log(jnp.sum(jnp.exp(z), axis=1, keepdims=True))
    o_ref[...] = z - lse                             # LogSoftmax(dim=1)


# ----------------------------- Pallas wrappers -------------------------------

def _round_up(x, m):
    return (x + m - 1) // m * m


def _full_spec(shape):
    n = len(shape)
    return pl.BlockSpec(tuple(shape), lambda *_, n=n: (0,) * n)


def fused_matmul(patches, w, bias, *, relu, residual=None):
    """(M,K)bf16 @ (K,N)bf16 + bias [+ residual] [+ ReLU] -> (M,N) bf16.

    Single full-K pass per tile (no K grid axis), 2-D (M,N) parallel grid,
    f32 MXU accumulation, epilogue fusion of bias / ReLU / residual."""
    M, K = patches.shape
    Kw, N = w.shape
    if Kw != K:                      # weight K was pre-padded to 128-multiple at init
        patches = jnp.pad(patches, ((0, 0), (0, Kw - K)))
        K = Kw
    tn = 128 if N % 128 == 0 else N
    tm = min(128, _round_up(M, 8))
    Mp = _round_up(M, tm)
    a = patches if Mp == M else jnp.pad(patches, ((0, Mp - M), (0, 0)))

    in_specs = [pl.BlockSpec((tm, K), lambda i, j: (i, 0)),
                pl.BlockSpec((K, tn), lambda i, j: (0, j)),
                pl.BlockSpec((1, tn), lambda i, j: (0, j))]
    args = [a, w, bias]
    if residual is not None:
        r = residual if Mp == M else jnp.pad(residual, ((0, Mp - M), (0, 0)))
        in_specs.append(pl.BlockSpec((tm, tn), lambda i, j: (i, j)))
        args.append(r)
        kernel = _mm_bias_res_relu_kernel
    else:
        kernel = functools.partial(_mm_bias_act_kernel, relu=relu)

    out = pl.pallas_call(
        kernel,
        out_shape=jax.ShapeDtypeStruct((Mp, N), jnp.bfloat16),
        grid_spec=pltpu.PrefetchScalarGridSpec(
            num_scalar_prefetch=0,
            grid=(Mp // tm, N // tn),
            in_specs=in_specs,
            out_specs=pl.BlockSpec((tm, tn), lambda i, j: (i, j))),
        compiler_params=pltpu.CompilerParams(
            dimension_semantics=("parallel", "parallel")),
    )(*args)
    return out if Mp == M else out[:M]


def conv_bn_act(x, cv, *, relu=True, residual=None):
    """NHWC bf16 conv with BatchNorm folded into (w, b); optional fused residual+ReLU."""
    w, bias = cv['w'], cv['b']
    kh, kw, stride, pad = cv['kh'], cv['kw'], cv['stride'], cv['pad']
    if pad > 0:
        x = jnp.pad(x, ((0, 0), (pad, pad), (pad, pad), (0, 0)))
    B, Hp, Wp, C = x.shape
    Ho = (Hp - kh) // stride + 1
    Wo = (Wp - kw) // stride + 1
    if kh == 1 and kw == 1:
        if stride == 1:
            patches = x.reshape(B * Hp * Wp, C)
        else:
            patches = x[:, ::stride, ::stride, :][:, :Ho, :Wo, :].reshape(B * Ho * Wo, C)
    else:
        # TODO(synk): im2col tap gather is still JAX glue (bf16); a per-tap grid
        # axis with shifted BlockSpecs would remove this HBM round-trip entirely.
        cols = [x[:, i:i + stride * Ho:stride, j:j + stride * Wo:stride, :]
                for i in range(kh) for j in range(kw)]
        patches = jnp.stack(cols, axis=3).reshape(B * Ho * Wo, kh * kw * C)
    res2 = None
    if residual is not None:
        res2 = residual.reshape(B * Ho * Wo, residual.shape[-1])
    out = fused_matmul(patches, w, bias, relu=relu, residual=res2)
    return out.reshape(B, Ho, Wo, w.shape[1])


def maxpool_3x3_s2(x):
    B, H, W, C = x.shape
    xp = jnp.pad(x, ((0, 0), (1, 1), (1, 1), (0, 0)), constant_values=-jnp.inf)
    Ho = (H + 2 - 3) // 2 + 1
    Wo = (W + 2 - 3) // 2 + 1
    cols = [xp[:, i:i + 2 * Ho:2, j:j + 2 * Wo:2, :]
            for i in range(3) for j in range(3)]
    stacked = jnp.stack(cols, axis=0)                # (9, B, Ho, Wo, C) bf16
    n = B * Ho * Wo * C
    if n % 128 == 0:                                 # lane-dense (rows, 128) layout
        rows, lanes = n // 128, 128
    else:
        rows, lanes = B * Ho * Wo, C
    stacked = stacked.reshape(9, rows, lanes)
    out = pl.pallas_call(
        _max9_kernel,
        out_shape=jax.ShapeDtypeStruct((rows, lanes), x.dtype),
        in_specs=[_full_spec((9, rows, lanes))],
        out_specs=_full_spec((rows, lanes)),
    )(stacked)
    return out.reshape(B, Ho, Wo, C)


def classifier_head(x, fc):
    w1, b1, w2, b2 = fc
    B, H, W, C = x.shape
    x3 = x.reshape(B, H * W, C)
    return pl.pallas_call(
        _head_kernel,
        out_shape=jax.ShapeDtypeStruct((B, w2.shape[1]), jnp.float32),
        in_specs=[_full_spec(x3.shape), _full_spec(w1.shape), _full_spec(b1.shape),
                  _full_spec(w2.shape), _full_spec(b2.shape)],
        out_specs=_full_spec((B, w2.shape[1])),
    )(x3, w1, b1, w2, b2)


# --------------------------- parameter construction -------------------------

def _conv_bn_params(key, kh, kw, cin, cout, stride, pad):
    """Conv weight + folded BatchNorm, pre-packed once: (K[,pad128], cout) bf16 + f32 bias."""
    kconv, kbn = jax.random.split(key)
    std = (2.0 / (kh * kw * cin)) ** 0.5
    w = jax.random.normal(kconv, (kh, kw, cin, cout), jnp.float32) * std
    k1, k2, k3, k4 = jax.random.split(kbn, 4)
    gamma = jax.random.uniform(k1, (cout,), jnp.float32, 0.5, 1.5)
    beta = jax.random.normal(k2, (cout,), jnp.float32) * 0.1
    mean = jax.random.normal(k3, (cout,), jnp.float32) * 0.1
    var = jax.random.uniform(k4, (cout,), jnp.float32, 0.5, 1.5)
    scale = gamma / jnp.sqrt(var + 1e-5)
    bias = beta - mean * scale
    K = kh * kw * cin
    w2d = w.reshape(K, cout) * scale[None, :]        # fold BN scale into the weight
    if K > 128 and K % 128 != 0:                     # pad K to a lane-aligned multiple once
        w2d = jnp.pad(w2d, ((0, _round_up(K, 128) - K), (0, 0)))
    return {'w': w2d.astype(jnp.bfloat16),
            'b': bias.reshape(1, cout).astype(jnp.float32),
            'kh': kh, 'kw': kw, 'stride': stride, 'pad': pad}


def init_resnet50_params(key, num_classes=10):
    keys = iter(jax.random.split(key, 256))
    nk = lambda: next(keys)
    params = {'conv1': _conv_bn_params(nk(), 7, 7, 3, 64, stride=2, pad=3)}

    stage_cfg = [(64, 3, 1), (128, 4, 2), (256, 6, 2), (512, 3, 2)]
    expansion = 4
    in_ch = 64
    layers = []
    for width, n_blocks, first_stride in stage_cfg:
        out_ch = width * expansion
        blocks = []
        for b in range(n_blocks):
            stride = first_stride if b == 0 else 1
            blk = {
                'c1': _conv_bn_params(nk(), 1, 1, in_ch, width, stride=1, pad=0),
                'c2': _conv_bn_params(nk(), 3, 3, width, width, stride=stride, pad=1),
                'c3': _conv_bn_params(nk(), 1, 1, width, out_ch, stride=1, pad=0),
            }
            if b == 0:  # projection shortcut
                blk['down'] = _conv_bn_params(nk(), 1, 1, in_ch, out_ch,
                                              stride=stride, pad=0)
            blocks.append(blk)
            in_ch = out_ch
        layers.append(blocks)
    params['layers'] = layers

    # classifier: Linear(2048,256) -> ReLU -> Dropout(0.4) -> Linear(256,nc) -> LogSoftmax
    lim1 = 1.0 / (2048 ** 0.5)
    lim2 = 1.0 / (256 ** 0.5)
    w1 = jax.random.uniform(nk(), (2048, 256), jnp.float32, -lim1, lim1)
    b1 = jax.random.uniform(nk(), (1, 256), jnp.float32, -lim1, lim1)
    w2 = jax.random.uniform(nk(), (256, num_classes), jnp.float32, -lim2, lim2)
    b2 = jax.random.uniform(nk(), (1, num_classes), jnp.float32, -lim2, lim2)
    params['fc'] = (w1, b1, w2, b2)
    return params


# ------------------------------- forward pass --------------------------------

def bottleneck(x, blk):
    identity = x
    if 'down' in blk:
        identity = conv_bn_act(x, blk['down'], relu=False)
    h = conv_bn_act(x, blk['c1'], relu=True)
    h = conv_bn_act(h, blk['c2'], relu=True)
    # residual add + ReLU fused into the final 1x1 conv's matmul epilogue
    return conv_bn_act(h, blk['c3'], relu=True, residual=identity)


def resnet_forward(x_nchw, params):
    # PyTorch NCHW input -> NHWC bf16 for the Pallas kernels (one-time transpose/cast)
    x = jnp.transpose(x_nchw, (0, 2, 3, 1)).astype(jnp.bfloat16)
    x = conv_bn_act(x, params['conv1'], relu=True)
    x = maxpool_3x3_s2(x)
    for stage in params['layers']:
        for blk in stage:
            x = bottleneck(x, blk)
    # adaptive avg-pool + flatten + classifier fused into the head kernel
    return classifier_head(x, params['fc'])


if __name__ == "__main__":
    key = jax.random.PRNGKey(0)
    kp, kx = jax.random.split(key)
    params = init_resnet50_params(kp, num_classes=10)

    # small deterministic input: batch=2, 3 channels, 32x32 spatial (NCHW)
    x = jax.random.normal(kx, (2, 3, 32, 32), jnp.float32)

    out = resnet_forward(x, params)
    out = jax.block_until_ready(out)
    assert out.shape == (2, 10), out.shape
    assert bool(jnp.all(jnp.isfinite(out)))
    # LogSoftmax rows should exponentiate-and-sum to ~1
    assert bool(jnp.allclose(jnp.sum(jnp.exp(out), axis=1), 1.0, atol=1e-4))
    print("KERNEL_OK")
</pallas_src>

<mosaic_0001>
module attributes {stable_mosaic.version = 11 : i64} {
  func.func @_mm_bias_act_kernel(%arg0: i32, %arg1: i32, %arg2: memref<128x256xbf16, #tpu.memory_space<vmem>>, %arg3: memref<256x64xbf16, #tpu.memory_space<vmem>>, %arg4: memref<1x64xf32, #tpu.memory_space<vmem>>, %arg5: memref<128x64xbf16, #tpu.memory_space<vmem>>) attributes {dimension_semantics = [#tpu.dimension_semantics<parallel>, #tpu.dimension_semantics<parallel>], iteration_bounds = array<i64: 4, 1>, scalar_prefetch = 0 : i64, scratch_operands = 0 : i64, tpu.core_type = #tpu.core_type<tc>, window_params = [{transform_indices = @transform_0, window_bounds = array<i64: 128, 256>}, {transform_indices = @transform_1, window_bounds = array<i64: 256, 64>}, {transform_indices = @transform_2, window_bounds = array<i64: 1, 64>}, {transform_indices = @transform_3, window_bounds = array<i64: 128, 64>}]} {
    %c0 = arith.constant 0 : index
    %c0_0 = arith.constant 0 : index
    %0 = vector.load %arg2[%c0, %c0_0] : memref<128x256xbf16, #tpu.memory_space<vmem>>, vector<128x256xbf16>
    %c0_1 = arith.constant 0 : index
    %c0_2 = arith.constant 0 : index
    %1 = vector.load %arg3[%c0_1, %c0_2] : memref<256x64xbf16, #tpu.memory_space<vmem>>, vector<256x64xbf16>
    %cst = arith.constant dense<0.000000e+00> : vector<128x64xf32>
    %2 = tpu.matmul %0, %1, %cst {dimension_numbers = #tpu.dot_dimension_numbers<[1], [0], [0], [1], [0, 0, 1, 1], [], []>} : vector<128x256xbf16>, vector<256x64xbf16>, vector<128x64xf32> -> vector<128x64xf32>
    %c0_3 = arith.constant 0 : index
    %c0_4 = arith.constant 0 : index
    %3 = vector.load %arg4[%c0_3, %c0_4] : memref<1x64xf32, #tpu.memory_space<vmem>>, vector<1x64xf32>
    %4 = vector.broadcast %3 : vector<1x64xf32> to vector<128x64xf32>
    %5 = arith.addf %2, %4 : vector<128x64xf32>
    %cst_5 = arith.constant 0.000000e+00 : f32
    %6 = vector.broadcast %cst_5 : f32 to vector<128x64xf32>
    %7 = arith.maximumf %5, %6 : vector<128x64xf32>
    %8 = arith.truncf %7 : vector<128x64xf32> to vector<128x64xbf16>
    %c0_6 = arith.constant 0 : index
    %c0_7 = arith.constant 0 : index
    %9 = vector.load %arg5[%c0_6, %c0_7] : memref<128x64xbf16, #tpu.memory_space<vmem>>, vector<128x64xbf16>
    tpu.vector_store %arg5[%c0_6, %c0_7], %8 {strides = array<i32>} : memref<128x64xbf16, #tpu.memory_space<vmem>>, vector<128x64xbf16>,
    return
  }
  func.func @transform_0(%arg0: i32, %arg1: i32) -> (i32, i32) {
    %c0_i32 = arith.constant 0 : i32
    %c0_i32_0 = arith.constant 0 : i32
    return %arg0, %c0_i32 : i32, i32
  }
  func.func @transform_1(%arg0: i32, %arg1: i32) -> (i32, i32) {
    %c0_i32 = arith.constant 0 : i32
    %c0_i32_0 = arith.constant 0 : i32
    return %c0_i32, %arg1 : i32, i32
  }
  func.func @transform_2(%arg0: i32, %arg1: i32) -> (i32, i32) {
    %c0_i32 = arith.constant 0 : i32
    %c0_i32_0 = arith.constant 0 : i32
    return %c0_i32, %arg1 : i32, i32
  }
  func.func @transform_3(%arg0: i32, %arg1: i32) -> (i32, i32) {
    %c0_i32 = arith.constant 0 : i32
    return %arg0, %arg1 : i32, i32
  }
}

</mosaic_0001>

<bundles_post_ra>
// kernel: tpu_custom_call.1
= control target key start
LH: loop header
LB: loop body
LE: loop exit
PB: predicated region body
PF: predicated region fallthrough
CT: control target
= control target key end

     0   :  { %8 = vsyncpa [#allocation3], 0  ;;  %s1363_s0 = inlined_call_operand.hbm [shape: bf16[512,256], index: 0, kind: input, shape index: {}]   ;;  %s1364_s1 = inlined_call_operand.vmem [shape: bf16[256,64], index: 1, kind: input, shape index: {}]   ;;  %s1365_s2 = inlined_call_operand.vmem [shape: f32[1,64], index: 2, kind: input, shape index: {}]   ;;  %s1366_s3 = inlined_call_operand.vmem [shape: bf16[512,64], index: 3, kind: output, shape index: {}]  }
   0x1   :  { %10 = vsyncpa [#allocation3 + $0x1], 0  ;;  %s1147_s12 = smov 0   ;;  %s1149_s13 = smov 0  }
   0x2   :  { %s1151_s14 = smov 0   ;;  %s1153_s15 = smov 0  }
   0x3   :  { %s1155_s16 = smov 0   ;;  %s1157_s17 = smov 0  }
   0x4 LB: > { %s784_s18 = sadd.s32 4294967295, %s1122_s17   ;;  %s28_s19 = sadd.s32 1, %s1118_s16  ;;  %s1122_s17 = sphi %s1157_s17, %s16_s17   ;;  %s1118_s16 = sphi %s1155_s16, %s1374_s16   ;;  %s1114_s15 = sphi %s1153_s15, %s1373_s15   ;;  %s1110_s14 = sphi %s1151_s14, %s1372_s14   ;;  %s1106_s13 = sphi %s1149_s13, %s1371_s13   ;;  %s1102_s12 = sphi %s1147_s12, %s1370_s12  }
   0x5   : > { %p30_p0 = scmp.ge.s32.totalorder %s28_s19, 4  ;;  %s35_s20 = sadd.s32 1, %s1110_s14 }
   0x6   : > { %p42_p1 = scmp.ne.s32.totalorder %s1110_s14, %s1106_s13  ;;  %p43_p2 = scmp.eq.s32.totalorder %s1122_s17, 0 }
   0x7   : > { %s1376_s19 = smov (%p30_p0, %s28_s19), 0  ;;  %p48_p4 = scmp.ne.s32.totalorder %s1106_s13, %s1102_s12 }
   0x8   : > { %p1183_p3 = por %p43_p2, %p42_p1  ;;  %s32_s22 = ssub.s32 %s1118_s16, %s1376_s19 }
   0x9   : > { %p49_p5 = scmp.eq.s32.totalorder %s784_s18, 0  ;;  %p33_p6 = scmp.eq.s32.totalorder %s32_s22, 0 }
   0xa   : > { %p953_p8 = scmp.lt.s32.totalorder %s1122_s17, 4  ;;  %s165_s25 = sand.u32 1, %s1110_s14  }
   0xb   : > { %p1190_p7 = por %p49_p5, %p48_p4  ;;  %s850_s26 = sshll.u32 %s1118_s16, 11 }
   0xc   : > { %s1196_s24 = scalar_select %p33_p6, %s1110_s14, %s35_s20  }
   0xd   : > { %s790_s27 = sshll.u32 %s165_s25, 7  ;;  %s176_s30 = scalar_lea.hbm %s1363_s0, %s850_s26 }
   0xe   : > { %s169_s4 = scalar_lea.vmem [#allocation2], %s790_s27  ;;  %p1205_p9 = pnand %p953_p8, %p1183_p3 }
   0xf   : > { %s177_s5 = sshll.u32 %s169_s4, 4  ;;  %s166_s7 = scalar_lea.sflag [#allocation3], %s165_s25  ;;  %s178_s5 = int_to_ptr.vmem [resolvable:$true] %s177_s5 }
  0x10   : > { %p1046_p10 = pneg %p1205_p9  ;;  %s1057_s8 = scalar_lea.vmem %s178_s5, 2048 }
  0x11   : > { %p1058_p11 = scmp.ne.s32.totalorder %s178_s5, %s1057_s8  ;;  %s1124_s9 = smov [#allocation2]  }
  0x12   : > { %s1062_s10 = sshll.u32 %s1124_s9, 4  ;;  %s1063_s10 = int_to_ptr.vmem [resolvable:$false] %s1062_s10 }
  0x13   : > { %p1060_p12 = pnand %p1058_p11, %p1046_p10  ;;  %s1064_s11 = scalar_lea.vmem %s1063_s10, 4096 }
  0x14   : > { %p1065_p0 = scmp.lt.s32.totalorder %s178_s5, %s1063_s10  ;;  %p1066_p1 = scmp.lt.s32.totalorder %s1064_s11, %s1057_s8 }
  0x15   : > { %p1061_p13 = pneg %p1060_p12 }
  0x16   : > { %p1067_p2 = por %p1066_p1, %p1065_p0 }
  0x18   : > { %p1068_p3 = pnand %p1067_p2, %p1061_p13 }
  0x1a   : > { %1071 = shalt.err (!%p1068_p3)
}
  0x1b   : > { %s1125_s12 = smov 128   ;;  %s1126_s18 = smov 8  }
  0x1c   : > { %952 = dma.hbm_to_vmem [thread:$0]  (!%p1205_p9), %s176_s30, 2048, %s178_s5, %s166_s7, %s1125_s12, %s1125_s12, %s1126_s18  }
  0x1d   : > { %p794_p4 = scmp.ge.s32.totalorder %s1122_s17, 1  ;;  %p185_p5 = scmp.lt.s32.totalorder %s1122_s17, 5 }
  0x1f   : > { %p186_p6 = pnand %p794_p4, %p185_p5 }
  0x20   : > { %s191_s20 = sand.u32 (!%p186_p6), 1, %s1106_s13  }
  0x21   : > { %189 = sbr.rel (%p186_p6) target bundleno = 304 (0x130), region = 32  ;;  %s795_s21 = sshll.u32 (!%p186_p6), %s191_s20, 7 }
  0x22   : > { %s192_s22 = scalar_lea.sflag (!%p186_p6), [#allocation3], %s191_s20  ;;  %s1216_s25 = scalar_lea.vmem (!%p186_p6), [#allocation2], %s795_s21 }
  0x26   : > { %1097 = dma.done.wait (%p1190_p7), %s192_s22, 2048  }
  0x27   : > { %1099 = vsyncadd (%p1190_p7), %s192_s22, 4294965248  ;;  %v1004_v0 = vld [vmem:[%s1364_s1 + $0x78] sm:$0xff]   ;;  %v1006_v2 = vld [vmem:[%s1364_s1 + $0x70] sm:$0xff]   ;;  %s796_s11 = sshll.u32 %s1114_s15, 4  ;;  %vm654_vm0 = vcmask 519168  }
  0x28   : > { %v1005_v1 = vld [vmem:[%s1364_s1 + $0x38] sm:$0xff]   ;;  %867 = vmatprep.subr.bf16.mxu0 %v1004_v0  ;;  %931 = vmatprep.subr.bf16.mxu1 %v1004_v0  ;;  %v1007_v3 = vld [vmem:[%s1364_s1 + $0x30] sm:$0xff]   ;;  %v1008_v4 = vld [vmem:[%s1364_s1 + $0x68] sm:$0xff]   ;;  %p237_p7 = scmp.lt.s32.totalorder %s796_s11, 63 }
  0x29   : > { %868 = vmatpush3.bf16.msra.mxu0 %v1005_v1  ;;  %939 = vmatpush3.bf16.msra.mxu1 %v1005_v1  ;;  %v1009_v5 = vld [vmem:[%s1364_s1 + $0x28] sm:$0xff]   ;;  %v1010_v6 = vld [vmem:[%s1364_s1 + $0x60] sm:$0xff]   ;;  %v1012_v8 = vld [vmem:[%s1364_s1 + $0x58] sm:$0xff]  }
  0x2a   : > { %869 = vmatprep.subr.bf16.mxu0 %v1006_v2  ;;  %932 = vmatprep.subr.bf16.mxu1 %v1006_v2  ;;  %v1011_v7 = vld [vmem:[%s1364_s1 + $0x20] sm:$0xff]   ;;  %v1013_v9 = vld [vmem:[%s1364_s1 + $0x18] sm:$0xff]   ;;  %v1014_v10 = vld [vmem:[%s1364_s1 + $0x50] sm:$0xff]   ;;  %s1378_s11 = smov (!%p237_p7, %s796_s11), 63 }
  0x2b   : > { %v1022_v11 = vld [vmem:[%s1216_s25 + $0x4] ss:$8 sps:$4 sm:$0xff]   ;;  %v1015_v13 = vld [vmem:[%s1364_s1 + $0x10] sm:$0xff]   ;;  %v1020_v18 = vld [vmem:[%s1216_s25] ss:$8 sps:$4 sm:$0xff]   ;;  %s797_s20 = sshll.u32 %s1378_s11, 2 }
  0x2c   : > { %v1025_v12 = vld [vmem:[%s1216_s25 + $0x44] ss:$8 sps:$4 sm:$0xff]   ;;  %509 = vmatprep.mubr.bf16.mxu0 %v1022_v11  ;;  %v1023_v19 = vld [vmem:[%s1216_s25 + $0x40] ss:$8 sps:$4 sm:$0xff]   ;;  %v1026_v20 = vld [vmem:[%s1216_s25 + $0x14] ss:$8 sps:$4 sm:$0xff]   ;;  %s1297_s21 = scalar_lea.vmem %s1366_s3, %s797_s20 }
  0x2d   : > { %870 = vmatpush3.bf16.msra.mxu0 %v1007_v3  ;;  %940 = vmatpush3.bf16.msra.mxu1 %v1007_v3  ;;  %v1016_v14 = vld [vmem:[%s1364_s1 + $0x48] sm:$0xff]   ;;  %v1018_v16 = vld [vmem:[%s1364_s1 + $0x40] sm:$0xff]   ;;  %v1028_v21 = vld [vmem:[%s1216_s25 + $0x54] ss:$8 sps:$4 sm:$0xff]  }
  0x2e   : > { %871 = vmatprep.subr.bf16.mxu0 %v1008_v4  ;;  %933 = vmatprep.subr.bf16.mxu1 %v1008_v4  ;;  %v1017_v15 = vld [vmem:[%s1364_s1 + $0x8] sm:$0xff]   ;;  %v1019_v17 = vld [vmem:[%s1364_s1] sm:$0xff]   ;;  %v1030_v22 = vld [vmem:[%s1216_s25 + $0x10] ss:$8 sps:$4 sm:$0xff]  }
  0x2f   : > { %541 = vmatprep.mubr.bf16.mxu1 %v1025_v12  ;;  %v1031_v23 = vld [vmem:[%s1216_s25 + $0x50] ss:$8 sps:$4 sm:$0xff]   ;;  %v1032_v24 = vld [vmem:[%s1216_s25 + $0x24] ss:$8 sps:$4 sm:$0xff]   ;;  %v1036_v26 = vld [vmem:[%s1216_s25 + $0x20] ss:$8 sps:$4 sm:$0xff]  }
  0x30   : > { %v1034_v25 = vld [vmem:[%s1216_s25 + $0x64] ss:$8 sps:$4 sm:$0xff]   ;;  %v1037_v27 = vld [vmem:[%s1216_s25 + $0x60] ss:$8 sps:$4 sm:$0xff]   ;;  %v1038_v28 = vld [vmem:[%s1216_s25 + $0x34] ss:$8 sps:$4 sm:$0xff]  }
  0x31   : > { %872 = vmatpush3.bf16.msra.mxu0 %v1009_v5  ;;  %941 = vmatpush3.bf16.msra.mxu1 %v1009_v5  ;;  %v1040_v29 = vld [vmem:[%s1216_s25 + $0x74] ss:$8 sps:$4 sm:$0xff]   ;;  %v1042_v30 = vld [vmem:[%s1216_s25 + $0x30] ss:$8 sps:$4 sm:$0xff]   ;;  %v1290_v34 = vld [vmem:[%s1365_s2] ss:$0 sm:$0xff] }
  0x32   : > { %873 = vmatprep.subr.bf16.mxu0 %v1010_v6  ;;  %934 = vmatprep.subr.bf16.mxu1 %v1010_v6  ;;  %v1043_v31 = vld [vmem:[%s1216_s25 + $0x70] ss:$8 sps:$4 sm:$0xff]  }
  0x35   : > { %874 = vmatpush3.bf16.msra.mxu0 %v1011_v7  ;;  %942 = vmatpush3.bf16.msra.mxu1 %v1011_v7 }
  0x36   : > { %875 = vmatprep.subr.bf16.mxu0 %v1012_v8  ;;  %935 = vmatprep.subr.bf16.mxu1 %v1012_v8 }
  0x39   : > { %876 = vmatpush3.bf16.msra.mxu0 %v1013_v9  ;;  %943 = vmatpush3.bf16.msra.mxu1 %v1013_v9 }
  0x3a   : > { %877 = vmatprep.subr.bf16.mxu0 %v1014_v10  ;;  %936 = vmatprep.subr.bf16.mxu1 %v1014_v10 }
  0x3d   : > { %878 = vmatpush3.bf16.msra.mxu0 %v1015_v13  ;;  %944 = vmatpush3.bf16.msra.mxu1 %v1015_v13 }
  0x3e   : > { %879 = vmatprep.subr.bf16.mxu0 %v1016_v14  ;;  %937 = vmatprep.subr.bf16.mxu1 %v1016_v14 }
  0x41   : > { %880 = vmatpush3.bf16.msra.mxu0 %v1017_v15  ;;  %945 = vmatpush3.bf16.msra.mxu1 %v1017_v15 }
  0x42   : > { %881 = vmatprep.subr.bf16.mxu0 %v1018_v16  ;;  %938 = vmatprep.subr.bf16.mxu1 %v1018_v16 }
  0x45   : > { %882 = vmatpush3.bf16.msra.mxu0 %v1019_v17  ;;  %946 = vmatpush3.bf16.msra.mxu1 %v1019_v17 }
  0x48   : > { %510 = vmatmul.mubr.bf16.vlgmr.msra.gmra.mxu0 %v1020_v18  ;;  %542 = vmatmul.mubr.bf16.vlgmr.msra.gmra.mxu1 %v1023_v19 }
  0x49   : > { %517 = vmatprep.mubr.bf16.mxu0 %v1026_v20  ;;  %549 = vmatprep.mubr.bf16.mxu1 %v1028_v21 }
  0x50   : > { %518 = vmatmul.mubr.bf16.gmra.mxu0 %v1030_v22  ;;  %550 = vmatmul.mubr.bf16.gmra.mxu1 %v1031_v23 }
  0x51   : > { %525 = vmatprep.mubr.bf16.mxu0 %v1032_v24  ;;  %557 = vmatprep.mubr.bf16.mxu1 %v1034_v25 }
  0x58   : > { %526 = vmatmul.mubr.bf16.gmra.mxu0 %v1036_v26  ;;  %558 = vmatmul.mubr.bf16.gmra.mxu1 %v1037_v27 }
  0x59   : > { %533 = vmatprep.mubr.bf16.mxu0 %v1038_v28  ;;  %565 = vmatprep.mubr.bf16.mxu1 %v1040_v29 }
  0x60   : > { %534 = vmatmul.mubr.bf16.gmra.mxu0 %v1042_v30  ;;  %566 = vmatmul.mubr.bf16.gmra.mxu1 %v1043_v31 }
 0x108   : > { %v883_v32 = vpop.f32.mrf.mxu0  ;;  %v907_v33 = vpop.f32.mrf.mxu1 }
 0x10a   : > { %v884_v35 = vpop.f32.mrf.mxu0  ;;  %v908_v36 = vpop.f32.mrf.mxu1 }
 0x10b   : > { %v885_v37 = vadd.f32 %v884_v35, %v883_v32  ;;  %v909_v38 = vadd.f32 %v908_v36, %v907_v33 }
 0x10c   : > { %v886_v39 = vpop.f32.mrf.mxu0  ;;  %v910_v40 = vpop.f32.mrf.mxu1 }
 0x10d   : > { %v512_v41 = vadd.f32 %v885_v37, %v1290_v34  ;;  %v544_v42 = vadd.f32 %v909_v38, %v1290_v34 }
 0x10e   : > { %v887_v43 = vpop.f32.mrf.mxu0  ;;  %v911_v44 = vpop.f32.mrf.mxu1 }
 0x10f   : > { %v574_v45 = vmax.f32 %v512_v41, 0.0  ;;  %v582_v46 = vmax.f32 %v544_v42, 0.0  ;;  %v888_v47 = vadd.f32 %v887_v43, %v886_v39  ;;  %v912_v48 = vadd.f32 %v911_v44, %v910_v40 }
 0x110   : > { %v889_v49 = vpop.f32.mrf.mxu0  ;;  %v913_v50 = vpop.f32.mrf.mxu1 }
 0x111   : > { %v851_v51 = vpack.c.bf16 %v574_v45, %v574_v45  ;;  %v859_v52 = vpack.c.bf16 %v582_v46, %v582_v46  ;;  %v515_v53 = vadd.f32 %v888_v47, %v1290_v34  ;;  %v547_v54 = vadd.f32 %v912_v48, %v1290_v34 }
 0x112   : > { %v890_v55 = vpop.f32.mrf.mxu0  ;;  %v914_v56 = vpop.f32.mrf.mxu1 }
 0x113   : > { %655 = vst.msk [vmem:[%s1297_s21] sm:$0xf] %vm654_vm0, %v851_v51  ;;  %663 = vst.msk [vmem:[%s1297_s21 + $0x20] sm:$0xf] %vm654_vm0, %v859_v52  ;;  %v575_v57 = vmax.f32 %v515_v53, 0.0  ;;  %v583_v58 = vmax.f32 %v547_v54, 0.0  ;;  %v891_v59 = vadd.f32 %v890_v55, %v889_v49  ;;  %v915_v60 = vadd.f32 %v914_v56, %v913_v50 }
 0x114   : > { %v892_v61 = vpop.f32.mrf.mxu0  ;;  %v916_v62 = vpop.f32.mrf.mxu1 }
 0x115   : > { %v852_v63 = vpack.c.bf16 %v575_v57, %v575_v57  ;;  %v860_v0 = vpack.c.bf16 %v583_v58, %v583_v58  ;;  %v520_v1 = vadd.f32 %v891_v59, %v1290_v34  ;;  %v552_v2 = vadd.f32 %v915_v60, %v1290_v34 }
 0x116   : > { %v893_v3 = vpop.f32.mrf.mxu0  ;;  %v917_v4 = vpop.f32.mrf.mxu1 }
 0x117   : > { %656 = vst.msk [vmem:[%s1297_s21 + $0x4] sm:$0xf] %vm654_vm0, %v852_v63  ;;  %664 = vst.msk [vmem:[%s1297_s21 + $0x24] sm:$0xf] %vm654_vm0, %v860_v0  ;;  %v576_v5 = vmax.f32 %v520_v1, 0.0  ;;  %v584_v6 = vmax.f32 %v552_v2, 0.0  ;;  %v894_v7 = vadd.f32 %v893_v3, %v892_v61  ;;  %v918_v8 = vadd.f32 %v917_v4, %v916_v62 }
 0x118   : > { %v895_v9 = vpop.f32.mrf.mxu0  ;;  %v919_v10 = vpop.f32.mrf.mxu1 }
 0x119   : > { %v853_v11 = vpack.c.bf16 %v576_v5, %v576_v5  ;;  %v861_v12 = vpack.c.bf16 %v584_v6, %v584_v6  ;;  %v523_v13 = vadd.f32 %v894_v7, %v1290_v34  ;;  %v555_v14 = vadd.f32 %v918_v8, %v1290_v34 }
 0x11a   : > { %v896_v15 = vpop.f32.mrf.mxu0  ;;  %v920_v16 = vpop.f32.mrf.mxu1 }
 0x11b   : > { %657 = vst.msk [vmem:[%s1297_s21 + $0x8] sm:$0xf] %vm654_vm0, %v853_v11  ;;  %665 = vst.msk [vmem:[%s1297_s21 + $0x28] sm:$0xf] %vm654_vm0, %v861_v12  ;;  %v577_v17 = vmax.f32 %v523_v13, 0.0  ;;  %v585_v18 = vmax.f32 %v555_v14, 0.0  ;;  %v897_v19 = vadd.f32 %v896_v15, %v895_v9  ;;  %v921_v20 = vadd.f32 %v920_v16, %v919_v10 }
 0x11c   : > { %v898_v21 = vpop.f32.mrf.mxu0  ;;  %v922_v22 = vpop.f32.mrf.mxu1 }
 0x11d   : > { %v854_v23 = vpack.c.bf16 %v577_v17, %v577_v17  ;;  %v862_v24 = vpack.c.bf16 %v585_v18, %v585_v18  ;;  %v528_v25 = vadd.f32 %v897_v19, %v1290_v34  ;;  %v560_v26 = vadd.f32 %v921_v20, %v1290_v34 }
 0x11e   : > { %v899_v27 = vpop.f32.mrf.mxu0  ;;  %v923_v28 = vpop.f32.mrf.mxu1 }
 0x11f   : > { %658 = vst.msk [vmem:[%s1297_s21 + $0xc] sm:$0xf] %vm654_vm0, %v854_v23  ;;  %666 = vst.msk [vmem:[%s1297_s21 + $0x2c] sm:$0xf] %vm654_vm0, %v862_v24  ;;  %v578_v29 = vmax.f32 %v528_v25, 0.0  ;;  %v586_v30 = vmax.f32 %v560_v26, 0.0  ;;  %v900_v31 = vadd.f32 %v899_v27, %v898_v21  ;;  %v924_v32 = vadd.f32 %v923_v28, %v922_v22 }
 0x120   : > { %v901_v33 = vpop.f32.mrf.mxu0  ;;  %v925_v35 = vpop.f32.mrf.mxu1 }
 0x121   : > { %v855_v36 = vpack.c.bf16 %v578_v29, %v578_v29  ;;  %v863_v37 = vpack.c.bf16 %v586_v30, %v586_v30  ;;  %v531_v38 = vadd.f32 %v900_v31, %v1290_v34  ;;  %v563_v39 = vadd.f32 %v924_v32, %v1290_v34 }
 0x122   : > { %v902_v40 = vpop.f32.mrf.mxu0  ;;  %v926_v41 = vpop.f32.mrf.mxu1 }
 0x123   : > { %659 = vst.msk [vmem:[%s1297_s21 + $0x10] sm:$0xf] %vm654_vm0, %v855_v36  ;;  %667 = vst.msk [vmem:[%s1297_s21 + $0x30] sm:$0xf] %vm654_vm0, %v863_v37  ;;  %v579_v42 = vmax.f32 %v531_v38, 0.0  ;;  %v587_v43 = vmax.f32 %v563_v39, 0.0  ;;  %v903_v44 = vadd.f32 %v902_v40, %v901_v33  ;;  %v927_v45 = vadd.f32 %v926_v41, %v925_v35 }
 0x124   : > { %v904_v46 = vpop.f32.mrf.mxu0  ;;  %v928_v47 = vpop.f32.mrf.mxu1 }
 0x125   : > { %v856_v48 = vpack.c.bf16 %v579_v42, %v579_v42  ;;  %v864_v49 = vpack.c.bf16 %v587_v43, %v587_v43  ;;  %v536_v50 = vadd.f32 %v903_v44, %v1290_v34  ;;  %v568_v51 = vadd.f32 %v927_v45, %v1290_v34 }
 0x126   : > { %v905_v52 = vpop.f32.mrf.mxu0  ;;  %v929_v53 = vpop.f32.mrf.mxu1 }
 0x127   : > { %660 = vst.msk [vmem:[%s1297_s21 + $0x14] sm:$0xf] %vm654_vm0, %v856_v48  ;;  %668 = vst.msk [vmem:[%s1297_s21 + $0x34] sm:$0xf] %vm654_vm0, %v864_v49  ;;  %v580_v54 = vmax.f32 %v536_v50, 0.0  ;;  %v588_v55 = vmax.f32 %v568_v51, 0.0  ;;  %v906_v56 = vadd.f32 %v905_v52, %v904_v46  ;;  %v930_v57 = vadd.f32 %v929_v53, %v928_v47 }
 0x129   : > { %v857_v58 = vpack.c.bf16 %v580_v54, %v580_v54  ;;  %v865_v59 = vpack.c.bf16 %v588_v55, %v588_v55  ;;  %v539_v60 = vadd.f32 %v906_v56, %v1290_v34  ;;  %v571_v61 = vadd.f32 %v930_v57, %v1290_v34 }
 0x12b   : > { %661 = vst.msk [vmem:[%s1297_s21 + $0x18] sm:$0xf] %vm654_vm0, %v857_v58  ;;  %669 = vst.msk [vmem:[%s1297_s21 + $0x38] sm:$0xf] %vm654_vm0, %v865_v59  ;;  %v581_v62 = vmax.f32 %v539_v60, 0.0  ;;  %v589_v63 = vmax.f32 %v571_v61, 0.0 }
 0x12d   : > { %v858_v0 = vpack.c.bf16 %v581_v62, %v581_v62  ;;  %v866_v1 = vpack.c.bf16 %v589_v63, %v589_v63 }
 0x12f   : > { %662 = vst.msk [vmem:[%s1297_s21 + $0x1c] sm:$0xf] %vm654_vm0, %v858_v0  ;;  %670 = vst.msk [vmem:[%s1297_s21 + $0x3c] sm:$0xf] %vm654_vm0, %v866_v1 }
 0x130 PF: > { %s16_s17 = sadd.s32 1, %s1122_s17   ;;  %s1370_s12 = smov %s1106_s13 }
 0x131   : > { %p13_p8 = scmp.ge.s32.totalorder %s16_s17, 6   ;;  %s1371_s13 = smov %s1110_s14 }
 0x132   : > { %s1372_s14 = smov %s1196_s24  ;;  %s1373_s15 = smov %s1118_s16 }
 0x133   : > { %s1374_s16 = smov %s1376_s19  ;;  %15 = sbr.rel (!%p13_p8) target bundleno = 4 (0x4), region = 78 }
 0x138   :  { %699 = vsyncpa [#allocation3], 1 }
 0x139   :  { %701 = vsyncpa [#allocation3 + $0x1], 1 }

</bundles_post_ra>
